<compile_context>
chip_gen: v7x
topology: tpu7x:2x2x1
jax: 0.10.0
libtpu: 0.0.40
codegen_flags: <defaults>
</compile_context>

<pallas_src>
import functools

import jax
import jax.numpy as jnp
from jax.experimental import pallas as pl
from jax.experimental.pallas import tpu as pltpu


# ---------------------------------------------------------------------------
# Hardware-aware sizing helpers.
# ---------------------------------------------------------------------------

_DEFAULT_VMEM_CAPACITY = 64 << 20   # conservative (v7x per-TC) when query fails


def _vmem_capacity_bytes():
    try:
        return int(pltpu.get_tpu_info().vmem_capacity_bytes)
    except Exception:
        return _DEFAULT_VMEM_CAPACITY


def _is_multi_tensorcore_chip():
    # Only v7x has 2 TensorCores per chip; v5e/v6e have one, so forcing >=2
    # grid steps there just shrinks the streaming tile for nothing.
    try:
        kind = jax.devices()[0].device_kind.lower()
    except Exception:
        return False
    return "v7" in kind


def _budgets(vmem_block_budget_bytes):
    vmem_cap = _vmem_capacity_bytes()
    # Leave ~25% headroom below physical capacity for weights, semaphores and
    # Mosaic internal scratch.
    vmem_limit = min((vmem_cap * 3) // 4, 112 << 20)
    if vmem_block_budget_bytes is None:
        # x and out blocks are each double-buffered -> ~4x the per-block
        # budget of pipeline footprint; /8 leaves slack for reduce temps.
        vmem_block_budget_bytes = min(vmem_limit // 8, 12 << 20)
    return vmem_block_budget_bytes, vmem_limit


# ---------------------------------------------------------------------------
# Kernels.
# ---------------------------------------------------------------------------

def _se_kernel(x_ref, w1t_ref, b1_ref, w2t_ref, b2_ref, o_ref, *, inv_l):
    """Single-pass path: whole (Bt, C, L) slab per grid step."""
    x = x_ref[...]                                                 # native dtype
    # Squeeze: f32-accumulated lane reduction, then one VPU multiply by the
    # compile-time constant 1/L (no divide, no explicit f32 slab copy).
    mean = jnp.sum(x, axis=-1, dtype=jnp.float32) * inv_l          # (Bt, C)
    # Excite: two tiny MXU matmuls on pre-transposed weights.
    h = jnp.dot(mean, w1t_ref[...],
                preferred_element_type=jnp.float32) + b1_ref[...]  # (Bt, H)
    h = jnp.maximum(h, 0.0)
    s = jnp.dot(h, w2t_ref[...],
                preferred_element_type=jnp.float32) + b2_ref[...]  # (Bt, C)
    s = jax.nn.sigmoid(s)
    # Scale: broadcast multiply over the length axis in the input dtype.
    o_ref[...] = x * s[:, :, None].astype(x.dtype)


def _se_squeeze_excite_kernel(x_ref, w1t_ref, b1_ref, w2t_ref, b2_ref, s_ref,
                              acc_ref, *, inv_l, length, l_tile):
    """Fallback pass 1: partial-sum squeeze over L tiles + excite -> scale s."""
    l_idx = pl.program_id(1)

    @pl.when(l_idx == 0)
    def _():
        acc_ref[...] = jnp.zeros_like(acc_ref)

    x = x_ref[...]                                                 # (Bt, C, Lt)
    if length % l_tile != 0:
        # Mask the padded tail of the last L tile so it does not pollute the sum.
        pos = jax.lax.broadcasted_iota(jnp.int32, (1, 1, l_tile), 2) + l_idx * l_tile
        x = jnp.where(pos < length, x, jnp.zeros_like(x))
    acc_ref[...] += jnp.sum(x, axis=-1, dtype=jnp.float32)         # (Bt, C)

    @pl.when(l_idx == pl.num_programs(1) - 1)
    def _():
        mean = acc_ref[...] * inv_l                                # (Bt, C)
        h = jnp.dot(mean, w1t_ref[...],
                    preferred_element_type=jnp.float32) + b1_ref[...]
        h = jnp.maximum(h, 0.0)
        s = jnp.dot(h, w2t_ref[...],
                    preferred_element_type=jnp.float32) + b2_ref[...]
        s_ref[...] = jax.nn.sigmoid(s)[:, :, None]                 # (Bt, C, 1)


def _scale_kernel(x_ref, s_ref, o_ref):
    """Fallback pass 2: elementwise x * s over L tiles."""
    x = x_ref[...]                                                 # (Bt, C, Lt)
    o_ref[...] = x * s_ref[...].astype(x.dtype)                    # s: (Bt, C, 1)


# ---------------------------------------------------------------------------
# Wrapper.
# ---------------------------------------------------------------------------

def nir_se_module(x, w1, b1, w2, b2, *, vmem_block_budget_bytes=None):
    """x: (N, C, L); w1: (H, C); b1: (H,)/(H,1); w2: (C, H); b2: (C,)/(C,1)."""
    N, C, L = x.shape
    H = w1.shape[0]
    itemsize = x.dtype.itemsize

    budget, vmem_limit = _budgets(vmem_block_budget_bytes)
    multi_tc = _is_multi_tensorcore_chip()

    # Pre-transpose weights so the in-kernel matmuls are (Bt,C)@(C,H) and
    # (Bt,H)@(H,C); reshape biases for row-broadcast.
    w1t = jnp.transpose(w1)                 # (C, H)
    w2t = jnp.transpose(w2)                 # (H, C)
    b1r = jnp.reshape(b1, (1, H))
    b2r = jnp.reshape(b2, (1, C))

    row_bytes = C * L * itemsize
    # Candidate L tile (multiple of 128 lanes) for the fallback path.
    l_tile = max(128, (budget // max(1, C * itemsize)) // 128 * 128)
    use_l_tiling = (row_bytes > budget) and (l_tile < L)

    if not use_l_tiling:
        # ---------------- single-pass path ----------------
        bt = max(1, min(N, budget // max(1, row_bytes)))
        if multi_tc and N >= 2:
            # Keep >=2 "parallel" grid steps so both v7x TensorCores get work.
            bt = min(bt, pl.cdiv(N, 2))
        grid_n = pl.cdiv(N, bt)

        cost = pl.CostEstimate(
            flops=4 * N * C * H,
            transcendentals=N * C,
            bytes_accessed=2 * N * C * L * itemsize + (2 * C * H + C + H) * 4,
        )
        kernel = functools.partial(_se_kernel, inv_l=float(1.0 / L))
        return pl.pallas_call(
            kernel,
            out_shape=jax.ShapeDtypeStruct((N, C, L), x.dtype),
            grid_spec=pltpu.PrefetchScalarGridSpec(
                num_scalar_prefetch=0,
                grid=(grid_n,),
                in_specs=[
                    pl.BlockSpec((bt, C, L), lambda n: (n, 0, 0)),   # x batch tile
                    pl.BlockSpec((C, H), lambda n: (0, 0)),          # w1^T (resident)
                    pl.BlockSpec((1, H), lambda n: (0, 0)),          # b1
                    pl.BlockSpec((H, C), lambda n: (0, 0)),          # w2^T (resident)
                    pl.BlockSpec((1, C), lambda n: (0, 0)),          # b2
                ],
                out_specs=pl.BlockSpec((bt, C, L), lambda n: (n, 0, 0)),
            ),
            compiler_params=pltpu.CompilerParams(
                dimension_semantics=("parallel",),
                vmem_limit_bytes=vmem_limit),
            cost_estimate=cost,
        )(x, w1t, b1r, w2t, b2r)

    # ---------------- L-tiled two-pass fallback ----------------
    grid_l = pl.cdiv(L, l_tile)
    bt = max(1, min(N, budget // max(1, C * l_tile * itemsize)))
    if multi_tc and N >= 2:
        bt = min(bt, pl.cdiv(N, 2))
    grid_n = pl.cdiv(N, bt)

    # Pass 1: partial-sum squeeze over L tiles (accumulator scratch) + excite.
    squeeze_kernel = functools.partial(
        _se_squeeze_excite_kernel, inv_l=float(1.0 / L), length=L, l_tile=l_tile)
    s = pl.pallas_call(
        squeeze_kernel,
        out_shape=jax.ShapeDtypeStruct((N, C, 1), jnp.float32),
        grid_spec=pltpu.PrefetchScalarGridSpec(
            num_scalar_prefetch=0,
            grid=(grid_n, grid_l),
            in_specs=[
                pl.BlockSpec((bt, C, l_tile), lambda n, l: (n, 0, l)),
                pl.BlockSpec((C, H), lambda n, l: (0, 0)),
                pl.BlockSpec((1, H), lambda n, l: (0, 0)),
                pl.BlockSpec((H, C), lambda n, l: (0, 0)),
                pl.BlockSpec((1, C), lambda n, l: (0, 0)),
            ],
            out_specs=pl.BlockSpec((bt, C, 1), lambda n, l: (n, 0, 0)),
            scratch_shapes=[pltpu.VMEM((bt, C), jnp.float32)],
        ),
        compiler_params=pltpu.CompilerParams(
            dimension_semantics=("parallel", "arbitrary"),
            vmem_limit_bytes=vmem_limit),
        cost_estimate=pl.CostEstimate(
            flops=4 * N * C * H,
            transcendentals=N * C,
            bytes_accessed=N * C * L * itemsize + N * C * 4),
    )(x, w1t, b1r, w2t, b2r)

    # Pass 2: elementwise scale over the same tiling.
    return pl.pallas_call(
        _scale_kernel,
        out_shape=jax.ShapeDtypeStruct((N, C, L), x.dtype),
        grid_spec=pltpu.PrefetchScalarGridSpec(
            num_scalar_prefetch=0,
            grid=(grid_n, grid_l),
            in_specs=[
                pl.BlockSpec((bt, C, l_tile), lambda n, l: (n, 0, l)),
                pl.BlockSpec((bt, C, 1), lambda n, l: (n, 0, 0)),
            ],
            out_specs=pl.BlockSpec((bt, C, l_tile), lambda n, l: (n, 0, l)),
        ),
        compiler_params=pltpu.CompilerParams(
            dimension_semantics=("parallel", "parallel"),
            vmem_limit_bytes=vmem_limit),
        cost_estimate=pl.CostEstimate(
            flops=N * C * L,
            transcendentals=0,
            bytes_accessed=2 * N * C * L * itemsize + N * C * 4),
    )(x, s)


# ---------------------------------------------------------------------------
# Reference + self-test.
# ---------------------------------------------------------------------------

def _reference(x, w1, b1, w2, b2):
    xf = x.astype(jnp.float32)
    mean = jnp.mean(xf, axis=-1, keepdims=True)                  # (N, C, 1)
    h = jnp.einsum('hc,ncl->nhl', w1, mean) + b1[None]           # (N, H, 1)
    h = jnp.maximum(h, 0.0)
    s = jnp.einsum('ch,nhl->ncl', w2, h) + b2[None]              # (N, C, 1)
    s = jax.nn.sigmoid(s)
    return (xf * s).astype(x.dtype)


if __name__ == "__main__":
    # Module config: channels=32, reduction=4 -> hidden=8
    N, C, L = 2, 32, 128
    reduction = 4
    H = C // reduction

    key = jax.random.PRNGKey(0)
    kx, k1, kb1, k2, kb2, kx2 = jax.random.split(key, 6)

    x = jax.random.normal(kx, (N, C, L), dtype=jnp.float32)

    # Deterministic "Conv1d(kernel_size=1)" parameters (weight (out,in,1) -> (out,in)).
    bound1 = 1.0 / jnp.sqrt(C)
    w1 = jax.random.uniform(k1, (H, C), minval=-bound1, maxval=bound1).astype(jnp.float32)
    b1 = jax.random.uniform(kb1, (H, 1), minval=-bound1, maxval=bound1).astype(jnp.float32)
    bound2 = 1.0 / jnp.sqrt(H)
    w2 = jax.random.uniform(k2, (C, H), minval=-bound2, maxval=bound2).astype(jnp.float32)
    b2 = jax.random.uniform(kb2, (C, 1), minval=-bound2, maxval=bound2).astype(jnp.float32)

    # --- Case 1: single-pass path (hardware-derived budgets) ---
    out = jax.block_until_ready(nir_se_module(x, w1, b1, w2, b2))
    ref = _reference(x, w1, b1, w2, b2)
    assert out.shape == (N, C, L)
    assert jnp.allclose(out, ref, atol=1e-5, rtol=1e-5), "single-pass mismatch vs reference"

    # --- Case 2: L-tiled fallback (tiny forced budget, ragged L to hit masking) ---
    N2, L2 = 4, 320
    x2 = jax.random.normal(kx2, (N2, C, L2), dtype=jnp.float32)
    out2 = jax.block_until_ready(
        nir_se_module(x2, w1, b1, w2, b2, vmem_block_budget_bytes=16 << 10))
    ref2 = _reference(x2, w1, b1, w2, b2)
    assert out2.shape == (N2, C, L2)
    assert jnp.allclose(out2, ref2, atol=1e-5, rtol=1e-5), "L-tiled fallback mismatch vs reference"

    print("KERNEL_OK")
</pallas_src>

<mosaic_0001>
module attributes {stable_mosaic.version = 11 : i64} {
  func.func @_se_kernel(%arg0: i32, %arg1: memref<2x32x128xf32, #tpu.memory_space<vmem>>, %arg2: memref<32x8xf32, #tpu.memory_space<vmem>>, %arg3: memref<1x8xf32, #tpu.memory_space<vmem>>, %arg4: memref<8x32xf32, #tpu.memory_space<vmem>>, %arg5: memref<1x32xf32, #tpu.memory_space<vmem>>, %arg6: memref<2x32x128xf32, #tpu.memory_space<vmem>>) attributes {dimension_semantics = [#tpu.dimension_semantics<parallel>], iteration_bounds = array<i64: 1>, scalar_prefetch = 0 : i64, scratch_operands = 0 : i64, tpu.core_type = #tpu.core_type<tc>, window_params = [{transform_indices = @transform_0, window_bounds = array<i64: 2, 32, 128>}, {pipeline_mode = #tpu.pipeline_mode<synchronous>, transform_indices = @transform_1, window_bounds = array<i64: 32, 8>}, {pipeline_mode = #tpu.pipeline_mode<synchronous>, transform_indices = @transform_2, window_bounds = array<i64: 1, 8>}, {pipeline_mode = #tpu.pipeline_mode<synchronous>, transform_indices = @transform_3, window_bounds = array<i64: 8, 32>}, {pipeline_mode = #tpu.pipeline_mode<synchronous>, transform_indices = @transform_4, window_bounds = array<i64: 1, 32>}, {transform_indices = @transform_5, window_bounds = array<i64: 2, 32, 128>}]} {
    %c0 = arith.constant 0 : index
    %c0_0 = arith.constant 0 : index
    %c0_1 = arith.constant 0 : index
    %0 = vector.load %arg1[%c0, %c0_0, %c0_1] : memref<2x32x128xf32, #tpu.memory_space<vmem>>, vector<2x32x128xf32>
    %cst = arith.constant dense<0.000000e+00> : vector<2x32xf32>
    %1 = vector.multi_reduction <add>, %0, %cst [2] : vector<2x32x128xf32> to vector<2x32xf32>
    %cst_2 = arith.constant 7.812500e-03 : f32
    %2 = vector.broadcast %cst_2 : f32 to vector<2x32xf32>
    %3 = arith.mulf %1, %2 : vector<2x32xf32>
    %c0_3 = arith.constant 0 : index
    %c0_4 = arith.constant 0 : index
    %4 = vector.load %arg2[%c0_3, %c0_4] : memref<32x8xf32, #tpu.memory_space<vmem>>, vector<32x8xf32>
    %cst_5 = arith.constant dense<0.000000e+00> : vector<2x8xf32>
    %5 = tpu.matmul %3, %4, %cst_5 {dimension_numbers = #tpu.dot_dimension_numbers<[1], [0], [0], [1], [0, 0, 1, 1], [], []>} : vector<2x32xf32>, vector<32x8xf32>, vector<2x8xf32> -> vector<2x8xf32>
    %c0_6 = arith.constant 0 : index
    %c0_7 = arith.constant 0 : index
    %6 = vector.load %arg3[%c0_6, %c0_7] : memref<1x8xf32, #tpu.memory_space<vmem>>, vector<1x8xf32>
    %7 = vector.broadcast %6 : vector<1x8xf32> to vector<2x8xf32>
    %8 = arith.addf %5, %7 : vector<2x8xf32>
    %cst_8 = arith.constant 0.000000e+00 : f32
    %9 = vector.broadcast %cst_8 : f32 to vector<2x8xf32>
    %10 = arith.maximumf %8, %9 : vector<2x8xf32>
    %c0_9 = arith.constant 0 : index
    %c0_10 = arith.constant 0 : index
    %11 = vector.load %arg4[%c0_9, %c0_10] : memref<8x32xf32, #tpu.memory_space<vmem>>, vector<8x32xf32>
    %cst_11 = arith.constant dense<0.000000e+00> : vector<2x32xf32>
    %12 = tpu.matmul %10, %11, %cst_11 {dimension_numbers = #tpu.dot_dimension_numbers<[1], [0], [0], [1], [0, 0, 1, 1], [], []>} : vector<2x8xf32>, vector<8x32xf32>, vector<2x32xf32> -> vector<2x32xf32>
    %c0_12 = arith.constant 0 : index
    %c0_13 = arith.constant 0 : index
    %13 = vector.load %arg5[%c0_12, %c0_13] : memref<1x32xf32, #tpu.memory_space<vmem>>, vector<1x32xf32>
    %14 = vector.broadcast %13 : vector<1x32xf32> to vector<2x32xf32>
    %15 = arith.addf %12, %14 : vector<2x32xf32>
    %16 = arith.negf %15 : vector<2x32xf32>
    %17 = math.exp %16 : vector<2x32xf32>
    %cst_14 = arith.constant 1.000000e+00 : f32
    %18 = vector.broadcast %cst_14 : f32 to vector<2x32xf32>
    %19 = arith.addf %18, %17 : vector<2x32xf32>
    %20 = arith.divf %18, %19 : vector<2x32xf32>
    %21 = vector.shape_cast %20 : vector<2x32xf32> to vector<2x32x1xf32>
    %22 = vector.broadcast %21 : vector<2x32x1xf32> to vector<2x32x128xf32>
    %23 = arith.mulf %0, %22 : vector<2x32x128xf32>
    %c0_15 = arith.constant 0 : index
    %c0_16 = arith.constant 0 : index
    %c0_17 = arith.constant 0 : index
    %24 = vector.load %arg6[%c0_15, %c0_16, %c0_17] : memref<2x32x128xf32, #tpu.memory_space<vmem>>, vector<2x32x128xf32>
    tpu.vector_store %arg6[%c0_15, %c0_16, %c0_17], %23 {strides = array<i32>} : memref<2x32x128xf32, #tpu.memory_space<vmem>>, vector<2x32x128xf32>,
    return
  }
  func.func @transform_0(%arg0: i32) -> (i32, i32, i32) {
    %c0_i32 = arith.constant 0 : i32
    %c0_i32_0 = arith.constant 0 : i32
    %c0_i32_1 = arith.constant 0 : i32
    return %arg0, %c0_i32, %c0_i32_0 : i32, i32, i32
  }
  func.func @transform_1(%arg0: i32) -> (i32, i32) {
    %c0_i32 = arith.constant 0 : i32
    %c0_i32_0 = arith.constant 0 : i32
    %c0_i32_1 = arith.constant 0 : i32
    return %c0_i32, %c0_i32_0 : i32, i32
  }
  func.func @transform_2(%arg0: i32) -> (i32, i32) {
    %c0_i32 = arith.constant 0 : i32
    %c0_i32_0 = arith.constant 0 : i32
    %c0_i32_1 = arith.constant 0 : i32
    return %c0_i32, %c0_i32_0 : i32, i32
  }
  func.func @transform_3(%arg0: i32) -> (i32, i32) {
    %c0_i32 = arith.constant 0 : i32
    %c0_i32_0 = arith.constant 0 : i32
    %c0_i32_1 = arith.constant 0 : i32
    return %c0_i32, %c0_i32_0 : i32, i32
  }
  func.func @transform_4(%arg0: i32) -> (i32, i32) {
    %c0_i32 = arith.constant 0 : i32
    %c0_i32_0 = arith.constant 0 : i32
    %c0_i32_1 = arith.constant 0 : i32
    return %c0_i32, %c0_i32_0 : i32, i32
  }
  func.func @transform_5(%arg0: i32) -> (i32, i32, i32) {
    %c0_i32 = arith.constant 0 : i32
    %c0_i32_0 = arith.constant 0 : i32
    %c0_i32_1 = arith.constant 0 : i32
    return %arg0, %c0_i32, %c0_i32_0 : i32, i32, i32
  }
}

</mosaic_0001>

<bundles_post_ra>
// kernel: tpu_custom_call.1
= control target key start
LH: loop header
LB: loop body
LE: loop exit
PB: predicated region body
PF: predicated region fallthrough
CT: control target
= control target key end

     0   :  { %10 = vsyncpa [#allocation3], 0  ;;  %s590_s0 = inlined_call_operand.hbm [shape: f32[2,32,128], index: 0, kind: input, shape index: {}]   ;;  %s591_s1 = inlined_call_operand.vmem [shape: f32[32,8], index: 1, kind: input, shape index: {}]   ;;  %s592_s2 = inlined_call_operand.vmem [shape: f32[1,8], index: 2, kind: input, shape index: {}]   ;;  %s593_s3 = inlined_call_operand.vmem [shape: f32[8,32], index: 3, kind: input, shape index: {}]   ;;  %s594_s4 = inlined_call_operand.vmem [shape: f32[1,32], index: 4, kind: input, shape index: {}]   ;;  %s595_s5 = inlined_call_operand.hbm [shape: f32[2,32,128], index: 5, kind: output, shape index: {}]  }
   0x1   :  { %11 = vsyncpa [#allocation4], 0  ;;  %s460_s18 = smov [#allocation2]   ;;  %s412_s22 = scalar_lea.hbm %s590_s0, 1024 }
   0x2   :  { %s17_s19 = sshll.u32 %s460_s18, 4  ;;  %p413_p0 = scmp.ne.s32.totalorder %s590_s0, %s412_s22  ;;  %s18_s19 = int_to_ptr.vmem [resolvable:$true] %s17_s19 }
   0x3   :  { %p416_p1 = scmp.lt.u32.totalorder %s412_s22, %s590_s0 }
   0x5   :  { %p418_p2 = pnand %p416_p1, %p413_p0 }
   0x7   :  { %421 = shalt.err (!%p418_p2)
}
   0x8   :  { %s422_s27 = scalar_lea.vmem %s18_s19, 1024  ;;  %p427_p4 = scmp.lt.s32.totalorder %s18_s19, %s18_s19 }
   0x9   :  { %p423_p3 = scmp.ne.s32.totalorder %s18_s19, %s422_s27  ;;  %p428_p5 = scmp.lt.s32.totalorder %s422_s27, %s422_s27 }
   0xb   :  { %p429_p6 = por %p428_p5, %p427_p4 }
   0xd   :  { %p430_p7 = pnand %p429_p6, %p423_p3 }
   0xf   :  { %433 = shalt.err (!%p430_p7)
}
  0x10   :  { %s461_s28 = smov 128   ;;  %s462_s29 = smov 8  }
  0x11   :  { %23 = dma.hbm_to_vmem [thread:$0]  %s590_s0, 1024, %s18_s19, [#allocation3], %s461_s28, %s461_s28, %s462_s29  }
  0x12   :  { %456 = dma.done.wait [#allocation3], 1024  }
  0x13   :  { %457 = vsyncadd [#allocation3], 4294966272  ;;  %v512_v0 = vld [vmem:[#allocation2 + $0x20] sm:$0xff]  ;;  %v518_v2 = vld [vmem:[#allocation2 + $0x28] sm:$0xff]  ;;  %v463_v11 = vmov 0.0|0.0   ;;  %vm464_vm0 = vmmov 0   ;;  %v86_v16 = vlaneseq }
  0x14   :  { %v514_v1 = vld [vmem:[#allocation2] sm:$0xff]  ;;  %51 = vadd.xlane.f32.xlu1 %v512_v0  ;;  %v520_v3 = vld [vmem:[#allocation2 + $0x8] sm:$0xff]  ;;  %v524_v4 = vld [vmem:[#allocation2 + $0x30] sm:$0xff]  ;;  %395 = vmatprep.subr.bf16.mxu0 %v463_v11  ;;  %v465_v15 = vmov 0.0   ;;  %vm97_vm1 = vcmask 130112   ;;  %vm104_vm2 = vcmask 195712  }
  0x15   :  { %43 = vadd.xlane.f32.xlu0 %v514_v1  ;;  %v526_v5 = vld [vmem:[#allocation2 + $0x10] sm:$0xff]  ;;  %v530_v6 = vld [vmem:[#allocation2 + $0x38] sm:$0xff]  ;;  %v67_v8 = vld [vmem:[%s591_s1] sm:$0xff]  ;;  %387 = vmatprep.mubr.msk.f32.mxu0 %vm464_vm0, %v465_v15  ;;  %v87_v19 = vand.u32 127, %v86_v16  ;;  %v548_v21 = vshrl.u32 %v86_v16, 7  ;;  %vm111_vm3 = vcmask 261312  }
  0x16   :  { %v532_v7 = vld [vmem:[#allocation2 + $0x18] sm:$0xff]  ;;  %v68_v9 = vld [vmem:[%s591_s1 + $0x8] sm:$0xff]  ;;  %v69_v12 = vld [vmem:[%s591_s1 + $0x10] sm:$0xff]  ;;  %390 = vmatprep.subr.mxu1 %v465_v15  ;;  %392 = vmatprep.mubr.msk.f32.mxu1 %vm464_vm0, %v465_v15  ;;  %vm132_vm4 = vcmask 1041409   ;;  %vm134_vm5 = vcmask 261120   ;;  %vm216_vm6 = vcmask 64512  }
  0x17   :  { %v396_v10 = vpack.c.bf16 %v68_v9, %v67_v8  ;;  %v70_v13 = vld [vmem:[%s591_s1 + $0x18] sm:$0xff]  ;;  %v92_v20 = vadd.s32 4294967288, %v87_v19  ;;  %v99_v24 = vadd.s32 4294967280, %v87_v19  ;;  %v106_v28 = vadd.s32 4294967272, %v87_v19  ;;  %v208_v57 = vld [vmem:[%s593_s3] sm:$0xff] }
  0x18   :  { %53 = vadd.xlane.f32.xlu1 %v518_v2  ;;  %v399_v14 = vpack.c.bf16 %v70_v13, %v69_v12  ;;  %v90_v29 = vsub.s32 %v87_v19, %v548_v21  ;;  %391 = vmatpush3.msra.mxu1 %v208_v57  ;;  %v367_v58 = vld [vmem:[%s592_s2] ss:$0 sm:$0xff]  ;;  %s466_s2 = smov [#allocation5]  }
  0x19   :  { %45 = vadd.xlane.f32.xlu0 %v520_v3  ;;  %397 = vmatpush3.bf16.msra.mxu0 %v396_v10  ;;  %v95_v25 = vsub.s32 %v92_v20, %v548_v21  ;;  %v102_v30 = vsub.s32 %v99_v24, %v548_v21  ;;  %v109_v39 = vsub.s32 %v106_v28, %v548_v21  ;;  %v369_v63 = vld [vmem:[%s594_s4] ss:$0 sm:$0xff]  ;;  %s355_s3 = sshll.u32 %s466_s2, 4  ;;  %s356_s3 = int_to_ptr.vmem [resolvable:$true] %s355_s3 }
  0x1a   :  { %398 = vmatprep.subr.bf16.mxu0 %v463_v11  ;;  %s434_s4 = scalar_lea.vmem %s356_s3, 1024  ;;  %p439_p9 = scmp.lt.s32.totalorder %s356_s3, %s356_s3 }
  0x1b   :  { %p435_p8 = scmp.ne.s32.totalorder %s356_s3, %s434_s4  ;;  %p440_p10 = scmp.lt.s32.totalorder %s434_s4, %s434_s4 }
  0x1c   :  { %55 = vadd.xlane.f32.xlu1 %v524_v4 }
  0x1d   :  { %47 = vadd.xlane.f32.xlu0 %v526_v5  ;;  %400 = vmatpush3.bf16.msra.mxu0 %v399_v14  ;;  %v298_v14 = vsub.s32 0, %v548_v21  ;;  %p441_p11 = por %p440_p10, %p439_p9 }
  0x1f   :  { %p442_p12 = pnand %p441_p11, %p435_p8 }
  0x20   :  { %57 = vadd.xlane.f32.xlu1 %v530_v6 }
  0x21   :  { %49 = vadd.xlane.f32.xlu0 %v532_v7 }
  0xa1   :  { %v52_v17 = vpop.xlane.xlu1 %51 }
  0xa2   :  { %v44_v18 = vpop.xlane.xlu0 %43  ;;  %v63_v33 = vmul.f32 0.0078125, %v52_v17  ;;  %v317_v17 = vsub.s32 1, %v548_v21 }
  0xa3   :  { %v59_v34 = vmul.f32 0.0078125, %v44_v18 }
  0xa4   :  { %v116_v44 = vrot.slane %v63_v33, %v90_v29 }
  0xa5   :  { %v54_v22 = vpop.xlane.xlu1 %53  ;;  %v91_v45 = vrot.slane %v59_v34, %v90_v29 }
  0xa6   :  { %v46_v23 = vpop.xlane.xlu0 %45  ;;  %v64_v26 = vmul.f32 0.0078125, %v54_v22 }
  0xa7   :  { %v60_v27 = vmul.f32 0.0078125, %v46_v23 }
  0xa8   :  { %v120_v37 = vrot.slane %v64_v26, %v95_v25 }
  0xa9   :  { %v56_v31 = vpop.xlane.xlu1 %55  ;;  %v96_v38 = vrot.slane %v60_v27, %v95_v25 }
  0xaa   :  { %v48_v32 = vpop.xlane.xlu0 %47  ;;  %v65_v35 = vmul.f32 0.0078125, %v56_v31  ;;  %v121_v48 = vsel %vm97_vm1, %v120_v37, %v116_v44 }
  0xab   :  { %v61_v36 = vmul.f32 0.0078125, %v48_v32  ;;  %v98_v49 = vsel %vm97_vm1, %v96_v38, %v91_v45 }
  0xac   :  { %v125_v40 = vrot.slane %v65_v35, %v102_v30 }
  0xad   :  { %v103_v41 = vrot.slane %v61_v36, %v102_v30  ;;  %v58_v42 = vpop.xlane.xlu1 %57 }
  0xae   :  { %v50_v43 = vpop.xlane.xlu0 %49  ;;  %v66_v46 = vmul.f32 0.0078125, %v58_v42  ;;  %v126_v52 = vsel %vm104_vm2, %v125_v40, %v121_v48 }
  0xaf   :  { %v62_v47 = vmul.f32 0.0078125, %v50_v43  ;;  %v105_v53 = vsel %vm104_vm2, %v103_v41, %v98_v49 }
  0xb0   :  { %v130_v50 = vrot.slane %v66_v46, %v109_v39 }
  0xb1   :  { %v110_v51 = vrot.slane %v62_v47, %v109_v39 }
  0xb2   :  { %v131_v55 = vsel %vm111_vm3, %v130_v50, %v126_v52 }
  0xb3   :  { %v112_v54 = vsel %vm111_vm3, %v110_v51, %v105_v53 }
  0xb4   :  { %v133_v56 = vsel %vm132_vm4, %v131_v55, %v112_v54 }
  0xb5   :  { %388 = vmatmul.mubr.msk.f32.vlgmr.msra.gmra.mrb[0].mxu0 %vm134_vm5, %v133_v56 }
 0x188   :  { %v203_v59 = vpop.f32.mrb[0].mxu0 }
 0x189   :  { %v204_v60 = vadd.f32 %v367_v58, %v203_v59  ;;  %v389_v61 = vpop.f32.mrb[1].mxu0 }
 0x18b   :  { %v207_v62 = vmax.f32 %v204_v60, 0.0 }
 0x18d   :  { %393 = vmatmul.mubr.msk.f32.vlgmr.msra.gmra.mrb[0].mxu1 %vm216_vm6, %v207_v62 }
 0x260   :  { %v286_v8 = vpop.f32.mrb[0].mxu1 }
 0x261   :  { %v287_v9 = vadd.f32 %v369_v63, %v286_v8  ;;  %v394_v10 = vpop.f32.mrb[1].mxu1 }
 0x263   :  { %v371_v11 = vmul.f32 -1.442695, %v287_v9 }
 0x265   :  { %408 = vpow2.f32 %v371_v11 }
 0x26f   :  { %v409_v12 = vpop.eup %408 }
 0x270   :  { %v293_v13 = vadd.f32 1.0, %v409_v12 }
 0x272   :  { %410 = vrcp.f32 %v293_v13 }
 0x27c   :  { %v411_v15 = vpop.eup %410 }
 0x27d   :  { %v299_v16 = vrot.slane %v411_v15, %v298_v14  ;;  %v318_v18 = vrot.slane %v411_v15, %v317_v17 }
 0x27f   :  { %305 = vbcast.lane.b32.xlu1 %v299_v16, 264  ;;  %301 = vbcast.lane.b32.xlu0 %v299_v16, 256 }
 0x283   :  { %309 = vbcast.lane.b32.xlu1 %v299_v16, 272  ;;  %320 = vbcast.lane.b32.xlu0 %v318_v18, 256 }
 0x287   :  { %313 = vbcast.lane.b32.xlu1 %v299_v16, 280  ;;  %328 = vbcast.lane.b32.xlu0 %v318_v18, 272 }
 0x28b   :  { %324 = vbcast.lane.b32.xlu1 %v318_v18, 264 }
 0x28f   :  { %332 = vbcast.lane.b32.xlu1 %v318_v18, 280 }
 0x2f1   :  { %v306_v19 = vpop.permute.xlu1 %305  ;;  %v302_v20 = vpop.permute.xlu0 %301 }
 0x2f2   :  { %v335_v22 = vmul.f32 %v306_v19, %v520_v3  ;;  %v334_v23 = vmul.f32 %v302_v20, %v514_v1 }
 0x2f4   :  { %343 = vst [vmem:[#allocation5 + $0x8] sm:$0xff] %v335_v22  ;;  %342 = vst [vmem:[#allocation5] sm:$0xff] %v334_v23 }
 0x2f5   :  { %v310_v24 = vpop.permute.xlu1 %309  ;;  %v321_v25 = vpop.permute.xlu0 %320 }
 0x2f6   :  { %v336_v21 = vmul.f32 %v310_v24, %v526_v5  ;;  %v338_v26 = vmul.f32 %v321_v25, %v512_v0 }
 0x2f8   :  { %344 = vst [vmem:[#allocation5 + $0x10] sm:$0xff] %v336_v21  ;;  %346 = vst [vmem:[#allocation5 + $0x20] sm:$0xff] %v338_v26 }
 0x2f9   :  { %v314_v27 = vpop.permute.xlu1 %313  ;;  %v329_v28 = vpop.permute.xlu0 %328 }
 0x2fa   :  { %v337_v29 = vmul.f32 %v314_v27, %v532_v7  ;;  %v340_v30 = vmul.f32 %v329_v28, %v524_v4 }
 0x2fc   :  { %345 = vst [vmem:[#allocation5 + $0x18] sm:$0xff] %v337_v29  ;;  %348 = vst [vmem:[#allocation5 + $0x30] sm:$0xff] %v340_v30 }
 0x2fd   :  { %v325_v3 = vpop.permute.xlu1 %324 }
 0x2fe   :  { %v339_v1 = vmul.f32 %v325_v3, %v518_v2 }
 0x300   :  { %347 = vst [vmem:[#allocation5 + $0x28] sm:$0xff] %v339_v1 }
 0x301   :  { %v333_v31 = vpop.permute.xlu1 %332 }
 0x302   :  { %v341_v5 = vmul.f32 %v333_v31, %v530_v6 }
 0x304   :  { %349 = vst [vmem:[#allocation5 + $0x38] sm:$0xff] %v341_v5 }
 0x305   :  { %445 = shalt.err (!%p442_p12)
}
 0x306   :  { %s446_s21 = scalar_lea.hbm %s595_s5, 1024 }
 0x307   :  { %p447_p13 = scmp.ne.s32.totalorder %s595_s5, %s446_s21  ;;  %p450_p0 = scmp.lt.u32.totalorder %s446_s21, %s595_s5 }
 0x309   :  { %p452_p1 = pnand %p450_p0, %p447_p13 }
 0x30b   :  { %455 = shalt.err (!%p452_p1)
}
 0x30c   :  { %361 = dma.vmem_to_hbm [thread:$0]  %s356_s3, 1024, %s595_s5, [#allocation4], %s461_s28, %s461_s28, %s462_s29  }
 0x30d   :  { %458 = dma.done.wait [#allocation4], 1024  }
 0x30e   :  { %459 = vsyncadd [#allocation4], 4294966272 }
 0x30f   :  { %365 = vsyncpa [#allocation3], 1 }
 0x310   :  { %366 = vsyncpa [#allocation4], 1 }

</bundles_post_ra>
